<compile_context>
chip_gen: v5e
topology: v5e:2x2
jax: 0.10.0
libtpu: 0.0.40
codegen_flags: <defaults>
</compile_context>

<pallas_src>
import jax
import jax.numpy as jnp
import numpy as np
from jax.experimental import pallas as pl
from jax.experimental.pallas import tpu as pltpu

_LANE = 128
_TARGET_BLOCK_BYTES = 2 * 1024 * 1024   # ~2 MiB per x block (x4 with dbl-buffered in+out)
_MAX_BATCH_PER_BLOCK = 8                # bound on the static in-kernel unroll


def _round_up(x, m):
    return ((x + m - 1) // m) * m


def _largest_divisor_leq(n, cap):
    cap = max(1, min(n, cap))
    for d in range(cap, 0, -1):
        if n % d == 0:
            return d
    return 1


def _choose_spatial_tile(S, C, target_bytes):
    """Lane-aligned spatial tile.  Prefers tiles that divide ceil(S/128)*128 so
    no HBM pad copy is needed whenever S is already a multiple of 128."""
    q = -(-S // _LANE)                              # S in 128-lane chunks (ceil)
    row_bytes = C * 4
    k_target = max(1, (target_bytes // row_bytes) // _LANE)
    if q <= k_target:
        return q * _LANE                            # whole spatial row in one tile
    lo = max(1, k_target // 2)
    for k in range(k_target, lo - 1, -1):           # big divisor => no padding
        if q % k == 0:
            return k * _LANE
    return k_target * _LANE                         # no good divisor; accept padding


def _scse_apply_kernel(gate_ref, x_ref, ws_ref, bs_ref, o_ref):
    """Blocks: gate (NB,C,1) VMEM, x (NB,C,TS) VMEM, ws (1,C) VMEM,
    bs (1,) SMEM, out (NB,C,TS) VMEM."""
    bs = bs_ref[0]                            # scalar bias from SMEM
    nb = x_ref.shape[0]
    for b in range(nb):                       # static, small unroll (nb <= 8)
        xb = x_ref[b]                         # (C, TS) f32
        # sSE branch: 1x1x1 conv C->1 (MXU matvec) + bias -> sigmoid   (1, TS)
        sse = jax.nn.sigmoid(
            jnp.dot(ws_ref[...], xb, preferred_element_type=jnp.float32) + bs)
        # Fused output: x*cSE + x*sSE == x * (cSE + sSE)
        o_ref[b] = xb * (gate_ref[b] + sse)   # (C,1)+(1,TS) broadcasts to (C,TS)


def scse_attention(x_ncdhw, w1, b1, w2, b2, ws, bs,
                   *, target_block_bytes=_TARGET_BLOCK_BYTES):
    """x_ncdhw: (N, C, D, H, W) float32.  Params are the 1x1x1 conv weights/biases."""
    N, C, D, H, W = x_ncdhw.shape
    S = D * H * W
    Cr = w1.shape[0]

    xf = x_ncdhw.reshape(N, C, S).astype(jnp.float32)

    # ---- cSE gate, hoisted out of the tiled path (O(N*C) work, done by XLA) ----
    pooled = jnp.mean(xf, axis=2)                                        # (N, C)
    h = jnp.maximum(pooled @ w1.reshape(Cr, C).T + b1.reshape(Cr), 0.0)  # (N, Cr)
    gate = jax.nn.sigmoid(h @ w2.reshape(C, Cr).T + b2.reshape(C))       # (N, C)
    gate = gate[:, :, None]                                              # (N, C, 1)

    # ---- tile selection ----
    ts = _choose_spatial_tile(S, C, target_block_bytes)
    s_pad = _round_up(S, ts)
    per_batch_bytes = C * s_pad * 4
    nb_cap = min(N, _MAX_BATCH_PER_BLOCK,
                 max(1, target_block_bytes // per_batch_bytes))
    nb = _largest_divisor_leq(N, nb_cap)      # never pad the batch dimension

    if s_pad != S:
        # Zero padding is safe: padded voxels produce 0 output and are sliced off.
        xf = jnp.pad(xf, ((0, 0), (0, 0), (0, s_pad - S)))

    wsr = ws.reshape(1, C).astype(jnp.float32)
    bsr = bs.reshape(1).astype(jnp.float32)

    block_bytes = nb * C * ts * 4
    vmem_limit = int(min(48 * 1024 * 1024, max(32 * 1024 * 1024, 6 * block_bytes)))

    grid = (N // nb, s_pad // ts)

    out = pl.pallas_call(
        _scse_apply_kernel,
        out_shape=jax.ShapeDtypeStruct((N, C, s_pad), jnp.float32),
        grid_spec=pltpu.PrefetchScalarGridSpec(
            num_scalar_prefetch=0,
            grid=grid,
            in_specs=[
                pl.BlockSpec((nb, C, 1), lambda n, s: (n, 0, 0)),     # cSE gate
                pl.BlockSpec((nb, C, ts), lambda n, s: (n, 0, s)),    # x tile
                pl.BlockSpec((1, C), lambda n, s: (0, 0)),            # sSE weight
                pl.BlockSpec(memory_space=pltpu.MemorySpace.SMEM),    # sSE bias (scalar)
            ],
            out_specs=pl.BlockSpec((nb, C, ts), lambda n, s: (n, 0, s)),
        ),
        compiler_params=pltpu.CompilerParams(
            dimension_semantics=("parallel", "parallel"),
            vmem_limit_bytes=vmem_limit),
    )(gate, xf, wsr, bsr)

    if s_pad != S:
        out = out[:, :, :S]
    return out.reshape(N, C, D, H, W)


def scse_reference(x, w1, b1, w2, b2, ws, bs):
    """Pure-JAX reference matching the PyTorch SCSEModule forward."""
    N, C = x.shape[:2]
    pooled = jnp.mean(x, axis=(2, 3, 4))                         # (N, C)
    h = jnp.maximum(pooled @ w1.T + b1, 0.0)                     # (N, Cr)
    cse = jax.nn.sigmoid(h @ w2.T + b2)[:, :, None, None, None]  # (N, C, 1,1,1)
    sse = jax.nn.sigmoid(
        jnp.einsum("ncdhw,c->ndhw", x, ws.reshape(C)) + bs.reshape(()))
    sse = sse[:, None, :, :, :]
    return x * cse + x * sse


if __name__ == "__main__":
    key = jax.random.PRNGKey(0)

    def make_params(k, C, Cr):
        k1, k2, k3, k4, k5, k6 = jax.random.split(k, 6)
        w1 = jax.random.normal(k1, (Cr, C), jnp.float32) * 0.1   # cSE conv1 weight
        b1 = jax.random.normal(k2, (Cr,), jnp.float32) * 0.1
        w2 = jax.random.normal(k3, (C, Cr), jnp.float32) * 0.1   # cSE conv2 weight
        b2 = jax.random.normal(k4, (C,), jnp.float32) * 0.1
        ws = jax.random.normal(k5, (1, C), jnp.float32) * 0.1    # sSE conv weight
        bs = jax.random.normal(k6, (1,), jnp.float32) * 0.1
        return w1, b1, w2, b2, ws, bs

    fn = jax.jit(scse_attention, static_argnames=("target_block_bytes",))

    # Case 1: in_channels=32, reduction=16 (Cr=2), spatial 4x4x8 -> S=128 (lane-aligned).
    kp, kx = jax.random.split(key)
    N, C, D, H, W, Cr = 2, 32, 4, 4, 8, 2
    x = jax.random.normal(kx, (N, C, D, H, W), jnp.float32)
    params = make_params(kp, C, Cr)
    out = jax.block_until_ready(fn(x, *params))
    ref = scse_reference(x, *params)
    np.testing.assert_allclose(np.asarray(out), np.asarray(ref), rtol=1e-5, atol=1e-5)

    # Case 2: non-128-aligned spatial extent (S=105) exercises the padding path.
    kp2, kx2 = jax.random.split(kp)
    N2, C2, D2, H2, W2, Cr2 = 3, 16, 3, 5, 7, 2
    x2 = jax.random.normal(kx2, (N2, C2, D2, H2, W2), jnp.float32)
    params2 = make_params(kp2, C2, Cr2)
    out2 = jax.block_until_ready(fn(x2, *params2))
    ref2 = scse_reference(x2, *params2)
    np.testing.assert_allclose(np.asarray(out2), np.asarray(ref2), rtol=1e-5, atol=1e-5)

    # Case 3: small block-size target forces the multi-tile spatial path
    # (divisor-based tile selection, grid = (2, 2)) without huge test arrays.
    kp3, kx3 = jax.random.split(kp2)
    N3, C3, D3, H3, W3, Cr3 = 2, 32, 8, 8, 8, 2
    x3 = jax.random.normal(kx3, (N3, C3, D3, H3, W3), jnp.float32)
    params3 = make_params(kp3, C3, Cr3)
    out3 = jax.block_until_ready(fn(x3, *params3, target_block_bytes=32 * 1024))
    ref3 = scse_reference(x3, *params3)
    np.testing.assert_allclose(np.asarray(out3), np.asarray(ref3), rtol=1e-5, atol=1e-5)

    print("KERNEL_OK")
</pallas_src>

<mosaic_0001>
module attributes {stable_mosaic.version = 11 : i64} {
  func.func @_scse_apply_kernel(%arg0: i32, %arg1: i32, %arg2: memref<2x32x1xf32, #tpu.memory_space<vmem>>, %arg3: memref<2x32x128xf32, #tpu.memory_space<vmem>>, %arg4: memref<1x32xf32, #tpu.memory_space<vmem>>, %arg5: memref<1xf32, #tpu.memory_space<smem>>, %arg6: memref<2x32x128xf32, #tpu.memory_space<vmem>>) attributes {dimension_semantics = [#tpu.dimension_semantics<parallel>, #tpu.dimension_semantics<parallel>], iteration_bounds = array<i64: 1, 1>, scalar_prefetch = 0 : i64, scratch_operands = 0 : i64, tpu.core_type = #tpu.core_type<tc>, window_params = [{transform_indices = @transform_0, window_bounds = array<i64: 2, 32, 1>}, {transform_indices = @transform_1, window_bounds = array<i64: 2, 32, 128>}, {pipeline_mode = #tpu.pipeline_mode<synchronous>, transform_indices = @transform_2, window_bounds = array<i64: 1, 32>}, {transform_indices = @transform_3, window_bounds = array<i64: 1>}, {transform_indices = @transform_4, window_bounds = array<i64: 2, 32, 128>}]} {
    %c0 = arith.constant 0 : index
    %0 = memref.load %arg5[%c0] : memref<1xf32, #tpu.memory_space<smem>>
    %c0_0 = arith.constant 0 : index
    %c0_1 = arith.constant 0 : index
    %c0_2 = arith.constant 0 : index
    %1 = vector.load %arg3[%c0_0, %c0_1, %c0_2] : memref<2x32x128xf32, #tpu.memory_space<vmem>>, vector<1x32x128xf32>
    %2 = vector.shape_cast %1 : vector<1x32x128xf32> to vector<32x128xf32>
    %c0_3 = arith.constant 0 : index
    %c0_4 = arith.constant 0 : index
    %3 = vector.load %arg4[%c0_3, %c0_4] : memref<1x32xf32, #tpu.memory_space<vmem>>, vector<1x32xf32>
    %cst = arith.constant dense<0.000000e+00> : vector<1x128xf32>
    %4 = tpu.matmul %3, %2, %cst {dimension_numbers = #tpu.dot_dimension_numbers<[1], [0], [0], [1], [0, 0, 1, 1], [], []>} : vector<1x32xf32>, vector<32x128xf32>, vector<1x128xf32> -> vector<1x128xf32>
    %5 = vector.broadcast %0 : f32 to vector<1x128xf32>
    %6 = arith.addf %4, %5 : vector<1x128xf32>
    %7 = arith.negf %6 : vector<1x128xf32>
    %8 = math.exp %7 : vector<1x128xf32>
    %cst_5 = arith.constant 1.000000e+00 : f32
    %9 = vector.broadcast %cst_5 : f32 to vector<1x128xf32>
    %10 = arith.addf %9, %8 : vector<1x128xf32>
    %11 = arith.divf %9, %10 : vector<1x128xf32>
    %c0_6 = arith.constant 0 : index
    %c0_7 = arith.constant 0 : index
    %c0_8 = arith.constant 0 : index
    %12 = vector.load %arg2[%c0_6, %c0_7, %c0_8] : memref<2x32x1xf32, #tpu.memory_space<vmem>>, vector<1x32x1xf32>
    %13 = vector.shape_cast %12 : vector<1x32x1xf32> to vector<32x1xf32>
    %14 = vector.broadcast %13 : vector<32x1xf32> to vector<32x128xf32>
    %15 = vector.broadcast %11 : vector<1x128xf32> to vector<32x128xf32>
    %16 = arith.addf %14, %15 : vector<32x128xf32>
    %17 = arith.mulf %2, %16 : vector<32x128xf32>
    %c0_9 = arith.constant 0 : index
    %c0_10 = arith.constant 0 : index
    %c0_11 = arith.constant 0 : index
    %18 = vector.load %arg6[%c0_9, %c0_10, %c0_11] : memref<2x32x128xf32, #tpu.memory_space<vmem>>, vector<1x32x128xf32>
    %19 = vector.shape_cast %18 : vector<1x32x128xf32> to vector<32x128xf32>
    %20 = vector.shape_cast %17 : vector<32x128xf32> to vector<1x32x128xf32>
    tpu.vector_store %arg6[%c0_9, %c0_10, %c0_11], %20 {strides = array<i32>} : memref<2x32x128xf32, #tpu.memory_space<vmem>>, vector<1x32x128xf32>,
    %c1 = arith.constant 1 : index
    %c0_12 = arith.constant 0 : index
    %c0_13 = arith.constant 0 : index
    %21 = vector.load %arg3[%c1, %c0_12, %c0_13] : memref<2x32x128xf32, #tpu.memory_space<vmem>>, vector<1x32x128xf32>
    %22 = vector.shape_cast %21 : vector<1x32x128xf32> to vector<32x128xf32>
    %c0_14 = arith.constant 0 : index
    %c0_15 = arith.constant 0 : index
    %23 = vector.load %arg4[%c0_14, %c0_15] : memref<1x32xf32, #tpu.memory_space<vmem>>, vector<1x32xf32>
    %cst_16 = arith.constant dense<0.000000e+00> : vector<1x128xf32>
    %24 = tpu.matmul %23, %22, %cst_16 {dimension_numbers = #tpu.dot_dimension_numbers<[1], [0], [0], [1], [0, 0, 1, 1], [], []>} : vector<1x32xf32>, vector<32x128xf32>, vector<1x128xf32> -> vector<1x128xf32>
    %25 = vector.broadcast %0 : f32 to vector<1x128xf32>
    %26 = arith.addf %24, %25 : vector<1x128xf32>
    %27 = arith.negf %26 : vector<1x128xf32>
    %28 = math.exp %27 : vector<1x128xf32>
    %cst_17 = arith.constant 1.000000e+00 : f32
    %29 = vector.broadcast %cst_17 : f32 to vector<1x128xf32>
    %30 = arith.addf %29, %28 : vector<1x128xf32>
    %31 = arith.divf %29, %30 : vector<1x128xf32>
    %c1_18 = arith.constant 1 : index
    %c0_19 = arith.constant 0 : index
    %c0_20 = arith.constant 0 : index
    %32 = vector.load %arg2[%c1_18, %c0_19, %c0_20] : memref<2x32x1xf32, #tpu.memory_space<vmem>>, vector<1x32x1xf32>
    %33 = vector.shape_cast %32 : vector<1x32x1xf32> to vector<32x1xf32>
    %34 = vector.broadcast %33 : vector<32x1xf32> to vector<32x128xf32>
    %35 = vector.broadcast %31 : vector<1x128xf32> to vector<32x128xf32>
    %36 = arith.addf %34, %35 : vector<32x128xf32>
    %37 = arith.mulf %22, %36 : vector<32x128xf32>
    %c1_21 = arith.constant 1 : index
    %c0_22 = arith.constant 0 : index
    %c0_23 = arith.constant 0 : index
    %38 = vector.load %arg6[%c1_21, %c0_22, %c0_23] : memref<2x32x128xf32, #tpu.memory_space<vmem>>, vector<1x32x128xf32>
    %39 = vector.shape_cast %38 : vector<1x32x128xf32> to vector<32x128xf32>
    %40 = vector.shape_cast %37 : vector<32x128xf32> to vector<1x32x128xf32>
    tpu.vector_store %arg6[%c1_21, %c0_22, %c0_23], %40 {strides = array<i32>} : memref<2x32x128xf32, #tpu.memory_space<vmem>>, vector<1x32x128xf32>,
    return
  }
  func.func @transform_0(%arg0: i32, %arg1: i32) -> (i32, i32, i32) {
    %c0_i32 = arith.constant 0 : i32
    %c0_i32_0 = arith.constant 0 : i32
    %c0_i32_1 = arith.constant 0 : i32
    return %arg0, %c0_i32, %c0_i32_0 : i32, i32, i32
  }
  func.func @transform_1(%arg0: i32, %arg1: i32) -> (i32, i32, i32) {
    %c0_i32 = arith.constant 0 : i32
    %c0_i32_0 = arith.constant 0 : i32
    return %arg0, %c0_i32, %arg1 : i32, i32, i32
  }
  func.func @transform_2(%arg0: i32, %arg1: i32) -> (i32, i32) {
    %c0_i32 = arith.constant 0 : i32
    %c0_i32_0 = arith.constant 0 : i32
    %c0_i32_1 = arith.constant 0 : i32
    return %c0_i32, %c0_i32_0 : i32, i32
  }
  func.func @transform_3(%arg0: i32, %arg1: i32) -> i32 {
    %c0_i32 = arith.constant 0 : i32
    %c0_i32_0 = arith.constant 0 : i32
    return %c0_i32 : i32
  }
  func.func @transform_4(%arg0: i32, %arg1: i32) -> (i32, i32, i32) {
    %c0_i32 = arith.constant 0 : i32
    %c0_i32_0 = arith.constant 0 : i32
    return %arg0, %c0_i32, %arg1 : i32, i32, i32
  }
}

</mosaic_0001>

<bundles_post_ra>
// kernel: scse_attention.1
= control target key start
LH: loop header
LB: loop body
LE: loop exit
PB: predicated region body
PF: predicated region fallthrough
CT: control target
= control target key end

     0   :  { %v224_v3 = vmov 0   ;;  %vm25_vm0 = vcmask 261120   ;;  %s363_s1 = inlined_call_operand.vmem [shape: f32[2,32,128], index: 1, kind: input, shape index: {}]   ;;  %s364_s0 = inlined_call_operand.vmem [shape: f32[2,32,1], index: 0, kind: input, shape index: {}]   ;;  %s365_s2 = inlined_call_operand.vmem [shape: f32[1,32], index: 2, kind: input, shape index: {}]   ;;  %s366_s3 = inlined_call_operand.<no memory space> [shape: f32[1], index: 3, kind: input, shape index: {}]   ;;  %s367_s4 = inlined_call_operand.vmem [shape: f32[2,32,128], index: 4, kind: output, shape index: {}]  }
   0x1   :  { %v253_v0 = vld [vmem:[%s363_s1 + $0x18] sm:$0xff]  ;;  %v263_v2 = vld [vmem:[%s363_s1 + $0x10] sm:$0xff]  ;;  %214 = vset.pattern.permute.xlu1 %v224_v3  ;;  %213 = vset.pattern.permute.xlu0 %v224_v3  ;;  %v275_v5 = vld [vmem:[%s363_s1 + $0x8] sm:$0xff]  ;;  %v24_v19 = vstv %s366_s3 }
   0x2   :  { %v258_v1 = vld [vmem:[%s363_s1 + $0x38] sm:$0xff]  ;;  %41 = vmatpush.msra.mxu0 %v253_v0  ;;  %v270_v4 = vld [vmem:[%s363_s1 + $0x30] sm:$0xff]  ;;  %v280_v6 = vld [vmem:[%s363_s1 + $0x28] sm:$0xff]  ;;  %215 = vset.pattern.permute.xlu2 %v224_v3 }
   0x3   :  { %126 = vmatpush.msra.mxu1 %v258_v1  ;;  %v70_v7 = vld [vmem:[%s364_s0 + $0x10] sm:$0xff]  ;;  %v68_v8 = vld [vmem:[%s364_s0] sm:$0xff]  ;;  %v71_v14 = vld [vmem:[%s364_s0 + $0x18] sm:$0xff] }
   0x4   :  { %42 = vmatpush.msra.mxu0 %v263_v2  ;;  %v293_v9 = vld [vmem:[%s363_s1] sm:$0xff]  ;;  %84 = vperm.xlu1 %214, %v70_v7   ;;  %v69_v15 = vld [vmem:[%s364_s0 + $0x8] sm:$0xff]  ;;  %v207_v17 = vld [vmem:[%s364_s0 + $0x38] sm:$0xff] }
   0x5   :  { %127 = vmatpush.msra.mxu1 %v270_v4  ;;  %v298_v10 = vld [vmem:[%s363_s1 + $0x20] sm:$0xff]  ;;  %74 = vperm.xlu0 %213, %v68_v8   ;;  %v205_v16 = vld [vmem:[%s364_s0 + $0x28] sm:$0xff]  ;;  %v206_v18 = vld [vmem:[%s364_s0 + $0x30] sm:$0xff] }
   0x6   :  { %43 = vmatpush.msra.mxu0 %v275_v5  ;;  %v23_v11 = vld [vmem:[%s365_s2] sm:$0x1] }
   0x7   :  { %128 = vmatpush.msra.mxu1 %v280_v6  ;;  %v110_v12 = vld [vmem:[%s365_s2] sm:$0x1] }
   0x8   :  { %v204_v13 = vld [vmem:[%s364_s0 + $0x20] sm:$0xff]  ;;  %44 = vmatpush.msra.mxu0 %v293_v9 }
   0x9   :  { %160 = vperm.xlu2 %215, %v204_v13   ;;  %129 = vmatpush.msra.mxu1 %v298_v10 }
   0xa   :  { %196 = vmatmul.msk.f32.vlgmr.msra.gmra.mxu0 %vm25_vm0, %v23_v11  ;;  %202 = vmatmul.msk.f32.vlgmr.msra.gmra.mxu1 %vm25_vm0, %v110_v12 }
   0xc   :  { %89 = vperm.xlu1 %214, %v71_v14  }
   0xd   :  { %79 = vperm.xlu0 %213, %v69_v15  }
  0x11   :  { %165 = vperm.xlu2 %215, %v205_v16  }
  0x14   :  { %175 = vperm.xlu1 %214, %v207_v17  }
  0x15   :  { %170 = vperm.xlu0 %213, %v206_v18  }
  0x63   :  { %v161_v44 = vpop.permute.xlu2 %160 }
  0x6b   :  { %v166_v13 = vpop.permute.xlu2 %165 }
  0x76   :  { %v85_v30 = vpop.permute.xlu1 %84 }
  0x77   :  { %v75_v31 = vpop.permute.xlu0 %74 }
  0x7e   :  { %v90_v37 = vpop.permute.xlu1 %89 }
  0x7f   :  { %v80_v40 = vpop.permute.xlu0 %79 }
  0x86   :  { %v176_v61 = vpop.permute.xlu1 %175 }
  0x87   :  { %v46_v20 = vpop.f32.mrf.mxu0  ;;  %v131_v21 = vpop.f32.mrf.mxu1 }
  0x88   :  { %v47_v22 = vadd.f32 %v46_v20, %v24_v19  ;;  %v132_v23 = vadd.f32 %v131_v21, %v24_v19  ;;  %v171_v3 = vpop.permute.xlu0 %170 }
  0x8a   :  { %v197_v24 = vmul.f32 -1.442695, %v47_v22  ;;  %v203_v25 = vmul.f32 -1.442695, %v132_v23 }
  0x8c   :  { %216 = vpow2.f32 %v197_v24 }
  0x8d   :  { %218 = vpow2.f32 %v203_v25 }
  0x92   :  { %v217_v26 = vpop.eup %216 }
  0x93   :  { %v219_v27 = vpop.eup %218  ;;  %v52_v28 = vadd.f32 1.0, %v217_v26 }
  0x94   :  { %v137_v29 = vadd.f32 1.0, %v219_v27 }
  0x95   :  { %220 = vrcp.f32 %v52_v28  ;;  %v64_v39 = vand.u32 2147483648, %v52_v28  ;;  %v62_v42 = vand.u32 2147483647, %v52_v28  ;;  %vm58_vm3 = vweird.f32 %v52_v28 }
  0x96   :  { %222 = vrcp.f32 %v137_v29  ;;  %v149_v43 = vand.u32 2147483648, %v137_v29  ;;  %v147_v46 = vand.u32 2147483647, %v137_v29  ;;  %vm143_vm5 = vweird.f32 %v137_v29 }
  0x97   :  { %v65_v48 = vor.u32 1.1754944e-38, %v64_v39  ;;  %vm63_vm6 = vcmp.eq.f32.partialorder %v62_v42, 8.507059e+37 }
  0x98   :  { %v150_v51 = vor.u32 1.1754944e-38, %v149_v43  ;;  %vm148_vm8 = vcmp.eq.f32.partialorder %v147_v46, 8.507059e+37 }
  0x9b   :  { %v221_v32 = vpop.eup %220 }
  0x9c   :  { %v223_v33 = vpop.eup %222  ;;  %v54_v34 = vmul.f32 %v221_v32, %v52_v28  ;;  %vm59_vm1 = vweird.f32 %v221_v32 }
  0x9d   :  { %v139_v35 = vmul.f32 %v223_v33, %v137_v29  ;;  %vm144_vm2 = vweird.f32 %v223_v33  ;;  %vm60_vm4 = vmor %vm58_vm3, %vm59_vm1 }
  0x9e   :  { %v55_v36 = vsub.f32 1.0, %v54_v34  ;;  %vm145_vm7 = vmor %vm143_vm5, %vm144_vm2 }
  0x9f   :  { %v140_v38 = vsub.f32 1.0, %v139_v35 }
  0xa0   :  { %v56_v41 = vmul.f32 %v221_v32, %v55_v36 }
  0xa1   :  { %v141_v45 = vmul.f32 %v223_v33, %v140_v38 }
  0xa2   :  { %v57_v47 = vadd.f32 %v221_v32, %v56_v41 }
  0xa3   :  { %v142_v49 = vadd.f32 %v223_v33, %v141_v45 }
  0xa4   :  { %v61_v50 = vsel %vm60_vm4, %v221_v32, %v57_v47 }
  0xa5   :  { %v66_v52 = vsel %vm63_vm6, %v65_v48, %v61_v50  ;;  %v146_v53 = vsel %vm145_vm7, %v223_v33, %v142_v49 }
  0xa6   :  { %v92_v54 = vperm.slane %v66_v52, 0  ;;  %v151_v55 = vsel %vm148_vm8, %v150_v51, %v146_v53 }
  0xa7   :  { %v178_v56 = vperm.slane %v151_v55, 0 }
  0xa8   :  { %v95_v57 = vadd.f32 %v92_v54, %v85_v30  ;;  %v93_v58 = vadd.f32 %v92_v54, %v75_v31  ;;  %v96_v59 = vadd.f32 %v92_v54, %v90_v37  ;;  %v94_v60 = vadd.f32 %v92_v54, %v80_v40 }
  0xa9   :  { %v179_v62 = vadd.f32 %v178_v56, %v161_v44  ;;  %v182_v63 = vadd.f32 %v178_v56, %v176_v61  ;;  %v181_v12 = vadd.f32 %v178_v56, %v171_v3  ;;  %v180_v15 = vadd.f32 %v178_v56, %v166_v13 }
  0xaa   :  { %v99_v7 = vmul.f32 %v95_v57, %v263_v2  ;;  %v97_v8 = vmul.f32 %v93_v58, %v293_v9  ;;  %v100_v11 = vmul.f32 %v96_v59, %v253_v0  ;;  %v98_v14 = vmul.f32 %v94_v60, %v275_v5 }
  0xab   :  { %v183_v16 = vmul.f32 %v298_v10, %v179_v62  ;;  %v186_v2 = vmul.f32 %v258_v1, %v182_v63  ;;  %v185_v0 = vmul.f32 %v270_v4, %v181_v12  ;;  %v184_v5 = vmul.f32 %v280_v6, %v180_v15 }
  0xac   :  { %103 = vst [vmem:[%s367_s4 + $0x10] sm:$0xff] %v99_v7 }
  0xad   :  { %101 = vst [vmem:[%s367_s4] sm:$0xff] %v97_v8 }
  0xae   :  { %104 = vst [vmem:[%s367_s4 + $0x18] sm:$0xff] %v100_v11 }
  0xaf   :  { %102 = vst [vmem:[%s367_s4 + $0x8] sm:$0xff] %v98_v14 }
  0xb0   :  { %208 = vst [vmem:[%s367_s4 + $0x20] sm:$0xff] %v183_v16 }
  0xb1   :  { %211 = vst [vmem:[%s367_s4 + $0x38] sm:$0xff] %v186_v2 }
  0xb2   :  { %210 = vst [vmem:[%s367_s4 + $0x30] sm:$0xff] %v185_v0 }
  0xb3   :  { %209 = vst [vmem:[%s367_s4 + $0x28] sm:$0xff] %v184_v5 }

</bundles_post_ra>
